<compile_context>
chip_gen: v5e
topology: v5e:2x2
jax: 0.10.0
libtpu: 0.0.40
codegen_flags: <defaults>
</compile_context>

<pallas_src>
import functools
import math

import jax
import jax.numpy as jnp
from jax import lax
from jax.experimental import pallas as pl
from jax.experimental.pallas import tpu as pltpu

LN_EPS = 1e-5
_INV_SQRT2 = 0.7071067811865476


def _round_up(x, m):
    return ((x + m - 1) // m) * m


def mlp_kernel(x_ref, g_ref, b_ref, w1_ref, b1_ref, w2_ref, b2_ref, o_ref,
               xn_ref, acc_ref, *, d_actual, use_residual):
    """Grid = (row_tiles, hidden_tiles). Hidden axis is the reduction axis."""
    h_idx = pl.program_id(1)
    last_h = pl.num_programs(1) - 1
    inv_d = jnp.float32(1.0 / d_actual)

    # --- hidden step 0: LayerNorm (once per row tile) + accumulator init ------
    @pl.when(h_idx == 0)
    def _():
        x = x_ref[...].astype(jnp.float32)
        # LayerNorm over the *unpadded* feature width. Padded lanes are zero,
        # so the sum is unaffected; a lane mask keeps them out of the variance.
        mean = jnp.sum(x, axis=-1, keepdims=True) * inv_d
        lane = lax.broadcasted_iota(jnp.int32, x.shape, 1)
        mask = (lane < d_actual).astype(jnp.float32)
        xc = (x - mean) * mask
        var = jnp.sum(xc * xc, axis=-1, keepdims=True) * inv_d
        xn = xc * lax.rsqrt(var + LN_EPS)
        xn = xn * g_ref[...] + b_ref[...]          # gamma/beta padded with zeros
        xn_ref[...] = xn.astype(xn_ref.dtype)      # bf16 matmul LHS, reused
        acc_ref[...] = jnp.zeros_like(acc_ref)

    # --- per hidden tile: fc1 slice -> exact GELU -> partial fc2 accumulate ---
    h = jnp.dot(xn_ref[...], w1_ref[...],
                preferred_element_type=jnp.float32) + b1_ref[...]
    h = 0.5 * h * (1.0 + lax.erf(h * _INV_SQRT2))  # exact GELU (erf form)
    acc_ref[...] += jnp.dot(h.astype(w2_ref.dtype), w2_ref[...],
                            preferred_element_type=jnp.float32)

    # --- last hidden step: bias + residual + store (lane-dense output) --------
    @pl.when(h_idx == last_h)
    def _():
        y = acc_ref[...] + b2_ref[...]
        if use_residual:
            y = y + x_ref[...].astype(jnp.float32)
        o_ref[...] = y.astype(o_ref.dtype)


def mlp_pallas(x2d, gamma, beta, w1, b1, w2, b2, *, use_residual=True,
               tm=256, th=512, weight_dtype=jnp.bfloat16):
    """x2d: (M, D) rows. Returns (M, O). tm/th are per-generation tuning knobs
    (tm=128 is enough on v5e; tm=256 for v6e/v7x; th trades VMEM vs. overhead)."""
    M, D = x2d.shape
    Din, H = w1.shape
    H2, O = w2.shape
    assert Din == D and H2 == H
    if use_residual:
        assert O == D, "residual path requires out_dim == in_dim"

    # Lane-dense padding: feature dims to multiples of 128, rows to the row tile.
    Dp = _round_up(D, 128)
    Hp = _round_up(H, 128)
    Op = _round_up(O, 128)
    tm = max(8, min(tm, _round_up(M, 8)))          # don't over-pad tiny inputs
    th = _round_up(min(th, Hp), 128)
    while Hp % th:                                  # hidden tile must divide Hp
        th += 128
    Mp = _round_up(M, tm)

    pad2 = lambda a, r, c: jnp.pad(a, ((0, r - a.shape[0]), (0, c - a.shape[1])))

    xp = pad2(x2d, Mp, Dp)
    g2 = pad2(gamma.reshape(1, D).astype(jnp.float32), 1, Dp)
    bt2 = pad2(beta.reshape(1, D).astype(jnp.float32), 1, Dp)
    w1p = pad2(w1.astype(weight_dtype), Dp, Hp)     # bf16 weights: half the DMA/VMEM
    b1p = pad2(b1.reshape(1, H).astype(jnp.float32), 1, Hp)
    w2p = pad2(w2.astype(weight_dtype), Hp, Op)
    b2p = pad2(b2.reshape(1, O).astype(jnp.float32), 1, Op)

    grid = (Mp // tm, Hp // th)
    kernel = functools.partial(mlp_kernel, d_actual=D, use_residual=use_residual)

    flops = 2 * Mp * (Dp * Hp + Hp * Op)
    bytes_accessed = int(xp.size * xp.dtype.itemsize
                         + w1p.size * w1p.dtype.itemsize
                         + w2p.size * w2p.dtype.itemsize
                         + Mp * Op * xp.dtype.itemsize)

    out = pl.pallas_call(
        kernel,
        out_shape=jax.ShapeDtypeStruct((Mp, Op), x2d.dtype),
        grid_spec=pltpu.PrefetchScalarGridSpec(
            num_scalar_prefetch=0,
            grid=grid,
            in_specs=[
                pl.BlockSpec((tm, Dp), lambda i, h: (i, 0)),   # x row tile (resident over h)
                pl.BlockSpec((1, Dp), lambda i, h: (0, 0)),    # gamma
                pl.BlockSpec((1, Dp), lambda i, h: (0, 0)),    # beta
                pl.BlockSpec((Dp, th), lambda i, h: (0, h)),   # W1 column tile
                pl.BlockSpec((1, th), lambda i, h: (0, h)),    # b1 tile
                pl.BlockSpec((th, Op), lambda i, h: (h, 0)),   # W2 row tile
                pl.BlockSpec((1, Op), lambda i, h: (0, 0)),    # b2
            ],
            out_specs=pl.BlockSpec((tm, Op), lambda i, h: (i, 0)),
            scratch_shapes=[
                pltpu.VMEM((tm, Dp), weight_dtype),   # normalized activations (matmul LHS)
                pltpu.VMEM((tm, Op), jnp.float32),    # fc2 accumulator
            ],
        ),
        compiler_params=pltpu.CompilerParams(
            dimension_semantics=("parallel", "arbitrary"),
            vmem_limit_bytes=64 * 1024 * 1024,
        ),
        cost_estimate=pl.CostEstimate(flops=flops,
                                      transcendentals=Mp * Hp,
                                      bytes_accessed=bytes_accessed),
    )(xp, g2, bt2, w1p, b1p, w2p, b2p)

    return out[:M, :O]


def mlp_forward(x, params, *, use_residual=True, weight_dtype=jnp.bfloat16):
    # x: (batch, seq, in_dim)
    B, S, D = x.shape
    x2d = x.reshape(B * S, D)
    y2d = mlp_pallas(x2d, params["gamma"], params["beta"],
                     params["w1"], params["b1"],
                     params["w2"], params["b2"],
                     use_residual=use_residual, weight_dtype=weight_dtype)
    return y2d.reshape(B, S, -1)


def init_params(key, in_dim, hidden_dim, out_dim):
    k1, k2, k3, k4 = jax.random.split(key, 4)
    lim1 = 1.0 / math.sqrt(in_dim)
    lim2 = 1.0 / math.sqrt(hidden_dim)
    return {
        "gamma": jnp.ones((in_dim,), jnp.float32),
        "beta": jnp.zeros((in_dim,), jnp.float32),
        "w1": jax.random.uniform(k1, (in_dim, hidden_dim), jnp.float32, -lim1, lim1),
        "b1": jax.random.uniform(k2, (hidden_dim,), jnp.float32, -lim1, lim1),
        "w2": jax.random.uniform(k3, (hidden_dim, out_dim), jnp.float32, -lim2, lim2),
        "b2": jax.random.uniform(k4, (out_dim,), jnp.float32, -lim2, lim2),
    }


def mlp_reference(x, p):
    # Pure-JAX f32 reference for sanity checking.
    mean = jnp.mean(x, axis=-1, keepdims=True)
    var = jnp.mean((x - mean) ** 2, axis=-1, keepdims=True)
    xn = (x - mean) / jnp.sqrt(var + LN_EPS) * p["gamma"] + p["beta"]
    h = xn @ p["w1"] + p["b1"]
    h = 0.5 * h * (1.0 + lax.erf(h * _INV_SQRT2))
    y = h @ p["w2"] + p["b2"]
    return y + x


if __name__ == "__main__":
    batch, seq, in_dim, hidden_dim = 2, 8, 32, 64
    out_dim = in_dim  # residual requires in_dim == out_dim

    key = jax.random.PRNGKey(0)
    kx, kp = jax.random.split(key)
    x = jax.random.normal(kx, (batch, seq, in_dim), jnp.float32)
    params = init_params(kp, in_dim, hidden_dim, out_dim)

    y_ref = mlp_reference(x, params)

    # Production path: bf16 matmul operands, f32 accumulate.
    y = mlp_forward(x, params)
    y = jax.block_until_ready(y)
    assert y.shape == (batch, seq, out_dim)
    assert jnp.allclose(y, y_ref, atol=2.5e-2, rtol=2.5e-2), "bf16 path mismatch"

    # Strict numeric check of the kernel structure with f32 matmul operands.
    y32 = mlp_forward(x, params, weight_dtype=jnp.float32)
    y32 = jax.block_until_ready(y32)
    assert jnp.allclose(y32, y_ref, atol=1e-4, rtol=1e-4), "f32 path mismatch"

    print("KERNEL_OK")
</pallas_src>

<mosaic_0001>
module attributes {stable_mosaic.version = 11 : i64} {
  func.func @mlp_kernel(%arg0: i32, %arg1: i32, %arg2: memref<16x128xf32, #tpu.memory_space<vmem>>, %arg3: memref<1x128xf32, #tpu.memory_space<vmem>>, %arg4: memref<1x128xf32, #tpu.memory_space<vmem>>, %arg5: memref<128x128xbf16, #tpu.memory_space<vmem>>, %arg6: memref<1x128xf32, #tpu.memory_space<vmem>>, %arg7: memref<128x128xbf16, #tpu.memory_space<vmem>>, %arg8: memref<1x128xf32, #tpu.memory_space<vmem>>, %arg9: memref<16x128xf32, #tpu.memory_space<vmem>>, %arg10: memref<16x128xbf16, #tpu.memory_space<vmem>>, %arg11: memref<16x128xf32, #tpu.memory_space<vmem>>) attributes {dimension_semantics = [#tpu.dimension_semantics<parallel>, #tpu.dimension_semantics<arbitrary>], iteration_bounds = array<i64: 1, 1>, scalar_prefetch = 0 : i64, scratch_operands = 2 : i64, tpu.core_type = #tpu.core_type<tc>, window_params = [{transform_indices = @transform_0, window_bounds = array<i64: 16, 128>}, {pipeline_mode = #tpu.pipeline_mode<synchronous>, transform_indices = @transform_1, window_bounds = array<i64: 1, 128>}, {pipeline_mode = #tpu.pipeline_mode<synchronous>, transform_indices = @transform_2, window_bounds = array<i64: 1, 128>}, {transform_indices = @transform_3, window_bounds = array<i64: 128, 128>}, {transform_indices = @transform_4, window_bounds = array<i64: 1, 128>}, {transform_indices = @transform_5, window_bounds = array<i64: 128, 128>}, {pipeline_mode = #tpu.pipeline_mode<synchronous>, transform_indices = @transform_6, window_bounds = array<i64: 1, 128>}, {transform_indices = @transform_7, window_bounds = array<i64: 16, 128>}]} {
    %c0_i32 = arith.constant 0 : i32
    %0 = arith.cmpi eq, %arg1, %c0_i32 : i32
    %1 = arith.extui %0 : i1 to i32
    %cst = arith.constant 3.125000e-02 : f32
    %c0_i32_0 = arith.constant 0 : i32
    %2 = arith.cmpi ne, %1, %c0_i32_0 : i32
    scf.if %2 {
      %c0_19 = arith.constant 0 : index
      %c0_20 = arith.constant 0 : index
      %26 = vector.load %arg2[%c0_19, %c0_20] : memref<16x128xf32, #tpu.memory_space<vmem>>, vector<16x128xf32>
      %cst_21 = arith.constant dense<0.000000e+00> : vector<16xf32>
      %27 = vector.multi_reduction <add>, %26, %cst_21 [1] : vector<16x128xf32> to vector<16xf32>
      %28 = vector.shape_cast %27 : vector<16xf32> to vector<16x1xf32>
      %29 = vector.broadcast %cst : f32 to vector<16x1xf32>
      %30 = arith.mulf %28, %29 : vector<16x1xf32>
      %31 = tpu.iota {dimensions = array<i32: 1>} : vector<16x128xi32>
      %c32_i32 = arith.constant 32 : i32
      %32 = vector.broadcast %c32_i32 : i32 to vector<16x128xi32>
      %33 = arith.cmpi slt, %31, %32 : vector<16x128xi32>
      %34 = arith.extui %33 : vector<16x128xi1> to vector<16x128xi32>
      %35 = arith.sitofp %34 : vector<16x128xi32> to vector<16x128xf32>
      %36 = vector.broadcast %30 : vector<16x1xf32> to vector<16x128xf32>
      %37 = arith.subf %26, %36 : vector<16x128xf32>
      %38 = arith.mulf %37, %35 : vector<16x128xf32>
      %39 = arith.mulf %38, %38 : vector<16x128xf32>
      %cst_22 = arith.constant dense<0.000000e+00> : vector<16xf32>
      %40 = vector.multi_reduction <add>, %39, %cst_22 [1] : vector<16x128xf32> to vector<16xf32>
      %41 = vector.shape_cast %40 : vector<16xf32> to vector<16x1xf32>
      %42 = vector.broadcast %cst : f32 to vector<16x1xf32>
      %43 = arith.mulf %41, %42 : vector<16x1xf32>
      %cst_23 = arith.constant 9.99999974E-6 : f32
      %44 = vector.broadcast %cst_23 : f32 to vector<16x1xf32>
      %45 = arith.addf %43, %44 : vector<16x1xf32>
      %46 = math.rsqrt %45 : vector<16x1xf32>
      %47 = vector.broadcast %46 : vector<16x1xf32> to vector<16x128xf32>
      %48 = arith.mulf %38, %47 : vector<16x128xf32>
      %c0_24 = arith.constant 0 : index
      %c0_25 = arith.constant 0 : index
      %49 = vector.load %arg3[%c0_24, %c0_25] : memref<1x128xf32, #tpu.memory_space<vmem>>, vector<1x128xf32>
      %50 = vector.broadcast %49 : vector<1x128xf32> to vector<16x128xf32>
      %51 = arith.mulf %48, %50 : vector<16x128xf32>
      %c0_26 = arith.constant 0 : index
      %c0_27 = arith.constant 0 : index
      %52 = vector.load %arg4[%c0_26, %c0_27] : memref<1x128xf32, #tpu.memory_space<vmem>>, vector<1x128xf32>
      %53 = vector.broadcast %52 : vector<1x128xf32> to vector<16x128xf32>
      %54 = arith.addf %51, %53 : vector<16x128xf32>
      %55 = arith.truncf %54 : vector<16x128xf32> to vector<16x128xbf16>
      %c0_28 = arith.constant 0 : index
      %c0_29 = arith.constant 0 : index
      %56 = vector.load %arg10[%c0_28, %c0_29] : memref<16x128xbf16, #tpu.memory_space<vmem>>, vector<16x128xbf16>
      tpu.vector_store %arg10[%c0_28, %c0_29], %55 {strides = array<i32>} : memref<16x128xbf16, #tpu.memory_space<vmem>>, vector<16x128xbf16>,
      %cst_30 = arith.constant 0.000000e+00 : f32
      %57 = vector.broadcast %cst_30 : f32 to vector<16x128xf32>
      %c0_31 = arith.constant 0 : index
      %c0_32 = arith.constant 0 : index
      %58 = vector.load %arg11[%c0_31, %c0_32] : memref<16x128xf32, #tpu.memory_space<vmem>>, vector<16x128xf32>
      tpu.vector_store %arg11[%c0_31, %c0_32], %57 {strides = array<i32>} : memref<16x128xf32, #tpu.memory_space<vmem>>, vector<16x128xf32>,
    } else {
    }
    %c0 = arith.constant 0 : index
    %c0_1 = arith.constant 0 : index
    %3 = vector.load %arg10[%c0, %c0_1] : memref<16x128xbf16, #tpu.memory_space<vmem>>, vector<16x128xbf16>
    %c0_2 = arith.constant 0 : index
    %c0_3 = arith.constant 0 : index
    %4 = vector.load %arg5[%c0_2, %c0_3] : memref<128x128xbf16, #tpu.memory_space<vmem>>, vector<128x128xbf16>
    %cst_4 = arith.constant dense<0.000000e+00> : vector<16x128xf32>
    %5 = tpu.matmul %3, %4, %cst_4 {dimension_numbers = #tpu.dot_dimension_numbers<[1], [0], [0], [1], [0, 0, 1, 1], [], []>} : vector<16x128xbf16>, vector<128x128xbf16>, vector<16x128xf32> -> vector<16x128xf32>
    %c0_5 = arith.constant 0 : index
    %c0_6 = arith.constant 0 : index
    %6 = vector.load %arg6[%c0_5, %c0_6] : memref<1x128xf32, #tpu.memory_space<vmem>>, vector<1x128xf32>
    %7 = vector.broadcast %6 : vector<1x128xf32> to vector<16x128xf32>
    %8 = arith.addf %5, %7 : vector<16x128xf32>
    %cst_7 = arith.constant 5.000000e-01 : f32
    %9 = vector.broadcast %cst_7 : f32 to vector<16x128xf32>
    %10 = arith.mulf %9, %8 : vector<16x128xf32>
    %cst_8 = arith.constant 0.707106769 : f32
    %11 = vector.broadcast %cst_8 : f32 to vector<16x128xf32>
    %12 = arith.mulf %8, %11 : vector<16x128xf32>
    %13 = math.erf %12 : vector<16x128xf32>
    %cst_9 = arith.constant 1.000000e+00 : f32
    %14 = vector.broadcast %cst_9 : f32 to vector<16x128xf32>
    %15 = arith.addf %14, %13 : vector<16x128xf32>
    %16 = arith.mulf %10, %15 : vector<16x128xf32>
    %c0_10 = arith.constant 0 : index
    %c0_11 = arith.constant 0 : index
    %17 = vector.load %arg11[%c0_10, %c0_11] : memref<16x128xf32, #tpu.memory_space<vmem>>, vector<16x128xf32>
    %18 = arith.truncf %16 : vector<16x128xf32> to vector<16x128xbf16>
    %c0_12 = arith.constant 0 : index
    %c0_13 = arith.constant 0 : index
    %19 = vector.load %arg7[%c0_12, %c0_13] : memref<128x128xbf16, #tpu.memory_space<vmem>>, vector<128x128xbf16>
    %cst_14 = arith.constant dense<0.000000e+00> : vector<16x128xf32>
    %20 = tpu.matmul %18, %19, %cst_14 {dimension_numbers = #tpu.dot_dimension_numbers<[1], [0], [0], [1], [0, 0, 1, 1], [], []>} : vector<16x128xbf16>, vector<128x128xbf16>, vector<16x128xf32> -> vector<16x128xf32>
    %21 = arith.addf %17, %20 : vector<16x128xf32>
    %c0_15 = arith.constant 0 : index
    %c0_16 = arith.constant 0 : index
    %22 = vector.load %arg11[%c0_15, %c0_16] : memref<16x128xf32, #tpu.memory_space<vmem>>, vector<16x128xf32>
    tpu.vector_store %arg11[%c0_15, %c0_16], %21 {strides = array<i32>} : memref<16x128xf32, #tpu.memory_space<vmem>>, vector<16x128xf32>,
    %c0_i32_17 = arith.constant 0 : i32
    %23 = arith.cmpi eq, %arg1, %c0_i32_17 : i32
    %24 = arith.extui %23 : i1 to i32
    %c0_i32_18 = arith.constant 0 : i32
    %25 = arith.cmpi ne, %24, %c0_i32_18 : i32
    scf.if %25 {
      %c0_19 = arith.constant 0 : index
      %c0_20 = arith.constant 0 : index
      %26 = vector.load %arg11[%c0_19, %c0_20] : memref<16x128xf32, #tpu.memory_space<vmem>>, vector<16x128xf32>
      %c0_21 = arith.constant 0 : index
      %c0_22 = arith.constant 0 : index
      %27 = vector.load %arg8[%c0_21, %c0_22] : memref<1x128xf32, #tpu.memory_space<vmem>>, vector<1x128xf32>
      %28 = vector.broadcast %27 : vector<1x128xf32> to vector<16x128xf32>
      %29 = arith.addf %26, %28 : vector<16x128xf32>
      %c0_23 = arith.constant 0 : index
      %c0_24 = arith.constant 0 : index
      %30 = vector.load %arg2[%c0_23, %c0_24] : memref<16x128xf32, #tpu.memory_space<vmem>>, vector<16x128xf32>
      %31 = arith.addf %29, %30 : vector<16x128xf32>
      %c0_25 = arith.constant 0 : index
      %c0_26 = arith.constant 0 : index
      %32 = vector.load %arg9[%c0_25, %c0_26] : memref<16x128xf32, #tpu.memory_space<vmem>>, vector<16x128xf32>
      tpu.vector_store %arg9[%c0_25, %c0_26], %31 {strides = array<i32>} : memref<16x128xf32, #tpu.memory_space<vmem>>, vector<16x128xf32>,
    } else {
    }
    return
  }
  func.func @transform_0(%arg0: i32, %arg1: i32) -> (i32, i32) {
    %c0_i32 = arith.constant 0 : i32
    %c0_i32_0 = arith.constant 0 : i32
    return %arg0, %c0_i32 : i32, i32
  }
  func.func @transform_1(%arg0: i32, %arg1: i32) -> (i32, i32) {
    %c0_i32 = arith.constant 0 : i32
    %c0_i32_0 = arith.constant 0 : i32
    %c0_i32_1 = arith.constant 0 : i32
    return %c0_i32, %c0_i32_0 : i32, i32
  }
  func.func @transform_2(%arg0: i32, %arg1: i32) -> (i32, i32) {
    %c0_i32 = arith.constant 0 : i32
    %c0_i32_0 = arith.constant 0 : i32
    %c0_i32_1 = arith.constant 0 : i32
    return %c0_i32, %c0_i32_0 : i32, i32
  }
  func.func @transform_3(%arg0: i32, %arg1: i32) -> (i32, i32) {
    %c0_i32 = arith.constant 0 : i32
    %c0_i32_0 = arith.constant 0 : i32
    return %c0_i32, %arg1 : i32, i32
  }
  func.func @transform_4(%arg0: i32, %arg1: i32) -> (i32, i32) {
    %c0_i32 = arith.constant 0 : i32
    %c0_i32_0 = arith.constant 0 : i32
    return %c0_i32, %arg1 : i32, i32
  }
  func.func @transform_5(%arg0: i32, %arg1: i32) -> (i32, i32) {
    %c0_i32 = arith.constant 0 : i32
    %c0_i32_0 = arith.constant 0 : i32
    return %arg1, %c0_i32 : i32, i32
  }
  func.func @transform_6(%arg0: i32, %arg1: i32) -> (i32, i32) {
    %c0_i32 = arith.constant 0 : i32
    %c0_i32_0 = arith.constant 0 : i32
    %c0_i32_1 = arith.constant 0 : i32
    return %c0_i32, %c0_i32_0 : i32, i32
  }
  func.func @transform_7(%arg0: i32, %arg1: i32) -> (i32, i32) {
    %c0_i32 = arith.constant 0 : i32
    %c0_i32_0 = arith.constant 0 : i32
    return %arg0, %c0_i32 : i32, i32
  }
}

</mosaic_0001>

<bundles_post_ra>
// kernel: tpu_custom_call.1
= control target key start
LH: loop header
LB: loop body
LE: loop exit
PB: predicated region body
PF: predicated region fallthrough
CT: control target
= control target key end

     0   :  { %12 = vsyncpa [#allocation5], 0  ;;  %s811_s0 = inlined_call_operand.hbm [shape: f32[16,128], index: 0, kind: input, shape index: {}]   ;;  %s812_s1 = inlined_call_operand.hbm [shape: f32[1,128], index: 1, kind: input, shape index: {}]   ;;  %s813_s2 = inlined_call_operand.vmem [shape: f32[1,128], index: 2, kind: input, shape index: {}]   ;;  %s814_s3 = inlined_call_operand.hbm [shape: bf16[128,128], index: 3, kind: input, shape index: {}]   ;;  %s815_s4 = inlined_call_operand.vmem [shape: f32[1,128], index: 4, kind: input, shape index: {}]   ;;  %s816_s5 = inlined_call_operand.hbm [shape: bf16[128,128], index: 5, kind: input, shape index: {}]   ;;  %s817_s6 = inlined_call_operand.vmem [shape: f32[1,128], index: 6, kind: input, shape index: {}]   ;;  %s818_s7 = inlined_call_operand.hbm [shape: f32[16,128], index: 7, kind: output, shape index: {}]  }
   0x1   :  { %13 = vsyncpa [#allocation8], 0 }
   0x2   :  { %14 = vsyncpa [#allocation11], 0  ;;  %s34_s26 = sshll.u32 %s812_s1, 4  ;;  %s35_s26 = int_to_ptr.hbm [resolvable:$true] %s34_s26 }
   0x3   :  { %15 = vsyncpa [#allocation6], 0  ;;  %s703_s27 = smov [#allocation7]   ;;  %s20_s8 = sshll.u32 %s811_s0, 4  ;;  %s21_s8 = int_to_ptr.hbm [resolvable:$true] %s20_s8 }
   0x4   :  { %s36_s28 = sshll.u32 %s703_s27, 4  ;;  %s704_s9 = smov [#allocation4]   ;;  %s37_s28 = int_to_ptr.vmem [resolvable:$true] %s36_s28 }
   0x5   :  { %39 = dma.hbm_to_vmem [thread:$0]  %s35_s26, 16, %s37_s28, [#allocation8]  }
   0x6   :  { %s22_s10 = sshll.u32 %s704_s9, 4  ;;  %s705_s11 = smov 128   ;;  %s23_s10 = int_to_ptr.vmem [resolvable:$true] %s22_s10 }
   0x7   :  { %s706_s12 = smov 8   ;;  %s46_s14 = sshll.u32 %s814_s3, 4  ;;  %s47_s14 = int_to_ptr.hbm [resolvable:$true] %s46_s14 }
   0x8   :  { %28 = dma.hbm_to_vmem [thread:$0]  %s21_s8, 256, %s23_s10, [#allocation5], %s705_s11, %s705_s11, %s706_s12  }
   0x9   :  { %s707_s15 = smov [#allocation9]   ;;  %s61_s18 = sshll.u32 %s816_s5, 4  ;;  %s62_s18 = int_to_ptr.hbm [resolvable:$true] %s61_s18 }
   0xa   :  { %s48_s16 = sshll.u32 %s707_s15, 4  ;;  %s708_s19 = smov 64   ;;  %s49_s16 = int_to_ptr.vmem [resolvable:$true] %s48_s16 }
   0xb   :  { %s709_s20 = smov 4   ;;  %s710_s21 = smov [#allocation10]  }
   0xc   :  { %54 = dma.hbm_to_vmem [thread:$0]  %s47_s14, 1024, %s49_s16, [#allocation8], %s708_s19, %s708_s19, %s709_s20  }
   0xd   :  { %s63_s22 = sshll.u32 %s710_s21, 4  ;;  %s64_s22 = int_to_ptr.vmem [resolvable:$true] %s63_s22 }
   0xe   :  { %69 = dma.hbm_to_vmem [thread:$0]  %s62_s18, 1024, %s64_s22, [#allocation11], %s708_s19, %s708_s19, %s709_s20  }
   0xf   :  { %695 = dma.done.wait [#allocation5], 256  }
  0x10   :  { %696 = vsyncadd [#allocation5], 4294967040 }
  0x11   :  { %697 = dma.done.wait [#allocation8], 1040  }
  0x12   :  { %698 = vsyncadd [#allocation8], 4294966256 }
  0x13   :  { %699 = dma.done.wait [#allocation11], 1024  }
  0x14   :  { %700 = vsyncadd [#allocation11], 4294966272  ;;  %v768_v0 = vld [vmem:[#allocation4] sm:$0xff]  ;;  %v771_v1 = vld [vmem:[#allocation4 + $0x8] sm:$0xff]  ;;  %v100_v2 = vlaneseq  ;;  %v711_v6 = vmov 0.0   ;;  %s712_s25 = smov [#allocation12]  }
  0x15   :  { %94 = vadd.xlane.f32.xlu0 %v768_v0  ;;  %v539_v16 = vld [vmem:[#allocation9 + $0x38] sm:$0xff]  ;;  %v538_v17 = vld [vmem:[#allocation9 + $0x30] sm:$0xff]  ;;  %v537_v18 = vld [vmem:[#allocation9 + $0x28] sm:$0xff]  ;;  %s443_s26 = sshll.u32 %s712_s25, 4  ;;  %s445_s29 = sshll.u32 %s818_s7, 4  ;;  %s444_s26 = int_to_ptr.vmem [resolvable:$true] %s443_s26  ;;  %s446_s29 = int_to_ptr.hbm [resolvable:$true] %s445_s29 }
  0x16   :  { %v101_v3 = vand.u32 127, %v100_v2  ;;  %235 = vmatpush.bf16.msra.mxu0 %v539_v16  ;;  %v536_v19 = vld [vmem:[#allocation9 + $0x20] sm:$0xff]  ;;  %v535_v20 = vld [vmem:[#allocation9 + $0x18] sm:$0xff]  ;;  %v534_v24 = vld [vmem:[#allocation9 + $0x10] sm:$0xff] }
  0x17   :  { %v533_v25 = vld [vmem:[#allocation9 + $0x8] sm:$0xff]  ;;  %v532_v28 = vld [vmem:[#allocation9] sm:$0xff]  ;;  %v563_v42 = vld [vmem:[#allocation7] ss:$0 sm:$0xff] }
  0x18   :  { %vm102_vm0 = vcmp.lt.s32.totalorder %v101_v3, 32  ;;  %v564_v46 = vld [vmem:[%s813_s2] ss:$0 sm:$0xff]  ;;  %v547_v55 = vld [vmem:[#allocation10 + $0x38] sm:$0xff]  ;;  %v546_v59 = vld [vmem:[#allocation10 + $0x30] sm:$0xff] }
  0x19   :  { %v460_v7 = vsel %vm102_vm0, 1.0, %v711_v6  ;;  %v565_v54 = vld [vmem:[%s815_s4] ss:$0 sm:$0xff]  ;;  %404 = vmatpush.bf16.msra.mxu1 %v547_v55  ;;  %v545_v61 = vld [vmem:[#allocation10 + $0x28] sm:$0xff]  ;;  %v542_v16 = vld [vmem:[#allocation10 + $0x10] sm:$0xff] }
  0x1a   :  { %236 = vmatpush.bf16.msra.mxu0 %v538_v17 }
  0x1d   :  { %96 = vadd.xlane.f32.xlu0 %v771_v1  ;;  %405 = vmatpush.bf16.msra.mxu1 %v546_v59 }
  0x1e   :  { %237 = vmatpush.bf16.msra.mxu0 %v537_v18 }
  0x21   :  { %406 = vmatpush.bf16.msra.mxu1 %v545_v61 }
  0x22   :  { %238 = vmatpush.bf16.msra.mxu0 %v536_v19 }
  0x26   :  { %239 = vmatpush.bf16.msra.mxu0 %v535_v20 }
  0x2a   :  { %240 = vmatpush.bf16.msra.mxu0 %v534_v24  ;;  %v541_v24 = vld [vmem:[#allocation10 + $0x8] sm:$0xff] }
  0x2e   :  { %241 = vmatpush.bf16.msra.mxu0 %v533_v25 }
  0x32   :  { %242 = vmatpush.bf16.msra.mxu0 %v532_v28 }
  0x88   :  { %v95_v4 = vpop.xlane.xlu0 %94 }
  0x89   :  { %v98_v5 = vmul.f32 0.03125, %v95_v4  ;;  %v544_v4 = vld [vmem:[#allocation10 + $0x20] sm:$0xff] }
  0x8a   :  { %407 = vmatpush.bf16.msra.mxu1 %v544_v4 }
  0x8b   :  { %v105_v8 = vsub.f32 %v768_v0, %v98_v5 }
  0x8d   :  { %v107_v9 = vmul.f32 %v460_v7, %v105_v8 }
  0x8f   :  { %v109_v10 = vmul.f32 %v107_v9, %v107_v9 }
  0x90   :  { %v97_v11 = vpop.xlane.xlu0 %96 }
  0x91   :  { %v99_v12 = vmul.f32 0.03125, %v97_v11  ;;  %111 = vadd.xlane.f32.xlu1 %v109_v10  ;;  %v543_v10 = vld [vmem:[#allocation10 + $0x18] sm:$0xff] }
  0x92   :  { %408 = vmatpush.bf16.msra.mxu1 %v543_v10 }
  0x93   :  { %v106_v13 = vsub.f32 %v771_v1, %v99_v12 }
  0x95   :  { %v108_v14 = vmul.f32 %v460_v7, %v106_v13 }
  0x96   :  { %409 = vmatpush.bf16.msra.mxu1 %v542_v16 }
  0x97   :  { %v110_v15 = vmul.f32 %v108_v14, %v108_v14 }
  0x99   :  { %113 = vadd.xlane.f32.xlu1 %v110_v15 }
  0x9a   :  { %410 = vmatpush.bf16.msra.mxu1 %v541_v24 }
 0x104   :  { %v112_v21 = vpop.xlane.xlu1 %111 }
 0x105   :  { %v115_v22 = vmul.f32 0.03125, %v112_v21 }
 0x107   :  { %v117_v23 = vadd.f32 1e-05, %v115_v22 }
 0x109   :  { %567 = vrsqrt.f32 %v117_v23  ;;  %vm125_vm2 = vweird.f32 %v117_v23 }
 0x10c   :  { %v114_v26 = vpop.xlane.xlu1 %113 }
 0x10d   :  { %v116_v27 = vmul.f32 0.03125, %v114_v26 }
 0x10f   :  { %v568_v29 = vpop.eup %567  ;;  %v118_v30 = vadd.f32 1e-05, %v116_v27 }
 0x110   :  { %v120_v31 = vmul.f32 %v568_v29, %v117_v23  ;;  %vm126_vm1 = vweird.f32 %v568_v29 }
 0x111   :  { %569 = vrsqrt.f32 %v118_v30  ;;  %vm127_vm3 = vmor %vm125_vm2, %vm126_vm1  ;;  %vm135_vm5 = vweird.f32 %v118_v30 }
 0x112   :  { %v121_v32 = vmul.f32 %v568_v29, %v120_v31  ;;  %v540_v31 = vld [vmem:[#allocation10] sm:$0xff] }
 0x113   :  { %411 = vmatpush.bf16.msra.mxu1 %v540_v31 }
 0x114   :  { %v122_v33 = vmul.f32 0.5, %v121_v32 }
 0x116   :  { %v123_v34 = vsub.f32 1.5, %v122_v33 }
 0x117   :  { %v570_v35 = vpop.eup %569 }
 0x118   :  { %v124_v36 = vmul.f32 %v568_v29, %v123_v34  ;;  %v130_v37 = vmul.f32 %v570_v35, %v118_v30  ;;  %vm136_vm4 = vweird.f32 %v570_v35 }
 0x119   :  { %vm137_vm6 = vmor %vm135_vm5, %vm136_vm4 }
 0x11a   :  { %v131_v38 = vmul.f32 %v570_v35, %v130_v37  ;;  %v128_v39 = vsel %vm127_vm3, %v568_v29, %v124_v36 }
 0x11b   :  { %v139_v43 = vmul.f32 %v128_v39, %v107_v9 }
 0x11c   :  { %v132_v40 = vmul.f32 0.5, %v131_v38 }
 0x11d   :  { %v145_v47 = vmul.f32 %v563_v42, %v139_v43 }
 0x11e   :  { %v133_v41 = vsub.f32 1.5, %v132_v40 }
 0x11f   :  { %v151_v50 = vadd.f32 %v564_v46, %v145_v47 }
 0x120   :  { %v134_v44 = vmul.f32 %v570_v35, %v133_v41 }
 0x122   :  { %v138_v45 = vsel %vm137_vm6, %v570_v35, %v134_v44 }
 0x123   :  { %v140_v48 = vmul.f32 %v138_v45, %v108_v14 }
 0x125   :  { %v146_v49 = vmul.f32 %v563_v42, %v140_v48 }
 0x127   :  { %v152_v51 = vadd.f32 %v564_v46, %v146_v49 }
 0x129   :  { %v551_v52 = vpack.c.bf16 %v152_v51, %v151_v50 }
 0x12b   :  { %552 = vst [vmem:[#allocation2] sm:$0xff] %v551_v52  }
 0x132   :  { %v531_v53 = vld [vmem:[#allocation2] sm:$0xff] }
 0x133   :  { %243 = vmatmul.bf16.vlgmr.msra.gmra.mxu0 %v531_v53 }
 0x1b0   :  { %v244_v56 = vpop.f32.mrf.mxu0 }
 0x1b1   :  { %v782_v57 = vadd.f32 %v565_v54, %v244_v56 }
 0x1b3   :  { %v785_v58 = vmul.f32 0.70710677, %v782_v57 }
 0x1b5   :  { %v253_v60 = vmul.f32 %v785_v58, %v785_v58 }
 0x1b7   :  { %v254_v62 = vmin.f32 %v253_v60, 16.0 }
 0x1b8   :  { %v246_v63 = vpop.f32.mrf.mxu0 }
 0x1b9   :  { %v255_v2 = vmul.f32 2.1237322e-06, %v254_v62  ;;  %v789_v3 = vadd.f32 %v565_v54, %v246_v63  ;;  %v266_v5 = vmul.f32 3.8918573e-05, %v254_v62 }
 0x1bb   :  { %v256_v6 = vadd.f32 0.00028619796, %v255_v2  ;;  %v792_v7 = vmul.f32 0.70710677, %v789_v3  ;;  %v267_v8 = vadd.f32 0.001143296, %v266_v5 }
 0x1bd   :  { %v293_v9 = vmul.f32 %v792_v7, %v792_v7  ;;  %v257_v11 = vmul.f32 %v256_v6, %v254_v62  ;;  %v268_v12 = vmul.f32 %v267_v8, %v254_v62 }
 0x1bf   :  { %v294_v13 = vmin.f32 %v293_v9, 16.0  ;;  %v269_v14 = vadd.f32 0.014752088, %v268_v12  ;;  %v258_v18 = vadd.f32 0.0036580483, %v257_v11 }
 0x1c1   :  { %v295_v15 = vmul.f32 2.1237322e-06, %v294_v13  ;;  %v306_v17 = vmul.f32 3.8918573e-05, %v294_v13  ;;  %v270_v19 = vmul.f32 %v269_v14, %v254_v62  ;;  %v259_v26 = vmul.f32 %v258_v18, %v254_v62 }
 0x1c3   :  { %v296_v20 = vadd.f32 0.00028619796, %v295_v15  ;;  %v307_v21 = vadd.f32 0.001143296, %v306_v17  ;;  %v271_v22 = vadd.f32 0.112945676, %v270_v19 }
 0x1c4   :  { %v260_v33 = vadd.f32 0.05243302, %v259_v26  ;;  %v249_v19 = vmul.f32 0.5, %v782_v57 }
 0x1c5   :  { %v297_v23 = vmul.f32 %v296_v20, %v294_v13  ;;  %v308_v25 = vmul.f32 %v307_v21, %v294_v13  ;;  %v272_v27 = vmul.f32 %v271_v22, %v254_v62  ;;  %v250_v20 = vmul.f32 0.5, %v789_v3 }
 0x1c6   :  { %v261_v39 = vmul.f32 %v260_v33, %v254_v62 }
 0x1c7   :  { %v298_v28 = vadd.f32 0.0036580483, %v297_v23  ;;  %v309_v29 = vadd.f32 0.014752088, %v308_v25  ;;  %v273_v30 = vadd.f32 0.4994258, %v272_v27 }
 0x1c8   :  { %v262_v43 = vadd.f32 0.18741608, %v261_v39 }
 0x1c9   :  { %v310_v32 = vmul.f32 %v309_v29, %v294_v13  ;;  %v274_v34 = vmul.f32 %v273_v30, %v254_v62  ;;  %v299_v35 = vmul.f32 %v298_v28, %v294_v13 }
 0x1ca   :  { %v263_v48 = vmul.f32 %v262_v43, %v254_v62 }
 0x1cb   :  { %v311_v36 = vadd.f32 0.112945676, %v310_v32  ;;  %v275_v37 = vadd.f32 1.0, %v274_v34  ;;  %v300_v40 = vadd.f32 0.05243302, %v299_v35 }
 0x1cc   :  { %v264_v54 = vadd.f32 1.1283791, %v263_v48 }
 0x1cd   :  { %v312_v38 = vmul.f32 %v311_v36, %v294_v13  ;;  %571 = vrcp.f32 %v275_v37  ;;  %v301_v44 = vmul.f32 %v300_v40, %v294_v13  ;;  %v287_v51 = vand.u32 2147483648, %v275_v37 }
 0x1ce   :  { %v285_v53 = vand.u32 2147483647, %v275_v37  ;;  %vm281_vm8 = vweird.f32 %v275_v37  ;;  %v265_v2 = vmul.f32 %v264_v54, %v785_v58 }
 0x1cf   :  { %v313_v41 = vadd.f32 0.4994258, %v312_v38  ;;  %v302_v49 = vadd.f32 0.18741608, %v301_v44  ;;  %v288_v60 = vor.u32 1.1754944e-38, %v287_v51 }
 0x1d0   :  { %vm286_vm10 = vcmp.eq.f32.partialorder %v285_v53, 8.507059e+37 }
 0x1d1   :  { %v314_v42 = vmul.f32 %v313_v41, %v294_v13  ;;  %v303_v56 = vmul.f32 %v302_v49, %v294_v13 }
 0x1d3   :  { %v315_v45 = vadd.f32 1.0, %v314_v42  ;;  %v572_v46 = vpop.eup %571  ;;  %v304_v5 = vadd.f32 1.1283791, %v303_v56 }
 0x1d4   :  { %v277_v47 = vmul.f32 %v572_v46, %v275_v37  ;;  %vm282_vm7 = vweird.f32 %v572_v46 }
 0x1d5   :  { %573 = vrcp.f32 %v315_v45  ;;  %vm283_vm9 = vmor %vm281_vm8, %vm282_vm7  ;;  %v327_v6 = vand.u32 2147483648, %v315_v45  ;;  %v325_v10 = vand.u32 2147483647, %v315_v45  ;;  %vm321_vm12 = vweird.f32 %v315_v45 }
 0x1d6   :  { %v278_v50 = vsub.f32 1.0, %v277_v47  ;;  %v305_v13 = vmul.f32 %v304_v5, %v792_v7  ;;  %v566_v7 = vld [vmem:[%s817_s6] ss:$0 sm:$0xff] }
 0x1d7   :  { %v328_v12 = vor.u32 1.1754944e-38, %v327_v6  ;;  %vm326_vm14 = vcmp.eq.f32.partialorder %v325_v10, 8.507059e+37 }
 0x1d8   :  { %v279_v52 = vmul.f32 %v572_v46, %v278_v50 }
 0x1da   :  { %v280_v59 = vadd.f32 %v572_v46, %v279_v52 }
 0x1db   :  { %v574_v55 = vpop.eup %573 }
 0x1dc   :  { %v317_v61 = vmul.f32 %v574_v55, %v315_v45  ;;  %v284_v63 = vsel %vm283_vm9, %v572_v46, %v280_v59  ;;  %vm322_vm11 = vweird.f32 %v574_v55 }
 0x1dd   :  { %v289_v4 = vsel %vm286_vm10, %v288_v60, %v284_v63  ;;  %vm323_vm13 = vmor %vm321_vm12, %vm322_vm11 }
 0x1de   :  { %v318_v62 = vsub.f32 1.0, %v317_v61  ;;  %v290_v8 = vmul.f32 %v289_v4, %v265_v2 }
 0x1e0   :  { %v319_v9 = vmul.f32 %v574_v55, %v318_v62  ;;  %v497_v14 = vclamps-f32 %v290_v8, 1.0 }
 0x1e2   :  { %v320_v11 = vadd.f32 %v574_v55, %v319_v9  ;;  %v333_v18 = vadd.f32 1.0, %v497_v14 }
 0x1e4   :  { %v324_v15 = vsel %vm323_vm13, %v574_v55, %v320_v11  ;;  %v335_v22 = vmul.f32 %v333_v18, %v249_v19 }
 0x1e5   :  { %v329_v16 = vsel %vm326_vm14, %v328_v12, %v324_v15 }
 0x1e6   :  { %v330_v17 = vmul.f32 %v329_v16, %v305_v13 }
 0x1e8   :  { %v498_v58 = vclamps-f32 %v330_v17, 1.0 }
 0x1ea   :  { %v334_v21 = vadd.f32 1.0, %v498_v58 }
 0x1ec   :  { %v336_v23 = vmul.f32 %v334_v21, %v250_v20 }
 0x1ee   :  { %v339_v24 = vpack.c.bf16 %v336_v23, %v335_v22 }
 0x1f0   :  { %412 = vmatmul.bf16.vlgmr.msra.gmra.mxu1 %v339_v24 }
 0x26d   :  { %v413_v25 = vpop.f32.mrf.mxu1 }
 0x26e   :  { %v431_v26 = vadd.f32 %v566_v7, %v413_v25 }
 0x270   :  { %v435_v27 = vadd.f32 %v431_v26, %v768_v0 }
 0x272   :  { %437 = vst [vmem:[#allocation12] sm:$0xff] %v435_v27 }
 0x275   :  { %v415_v28 = vpop.f32.mrf.mxu1 }
 0x276   :  { %v432_v57 = vadd.f32 %v566_v7, %v415_v28 }
 0x278   :  { %v436_v3 = vadd.f32 %v432_v57, %v771_v1 }
 0x27a   :  { %438 = vst [vmem:[#allocation12 + $0x8] sm:$0xff] %v436_v3 }
 0x27b   :  { %451 = dma.vmem_to_hbm [thread:$0]  %s444_s26, 256, %s446_s29, [#allocation6], %s705_s11, %s705_s11, %s706_s12  }
 0x27c   :  { %701 = dma.done.wait [#allocation6], 256  }
 0x27d   :  { %702 = vsyncadd [#allocation6], 4294967040 }
 0x27e   :  { %456 = vsyncpa [#allocation5], 1 }
 0x27f   :  { %457 = vsyncpa [#allocation8], 1 }
 0x280   :  { %458 = vsyncpa [#allocation11], 1 }
 0x281   :  { %459 = vsyncpa [#allocation6], 1 }

</bundles_post_ra>
